<compile_context>
chip_gen: v7x
topology: tpu7x:2x2x1
jax: 0.10.0
libtpu: 0.0.40
codegen_flags: <defaults>
</compile_context>

<pallas_src>
import numpy as np
import jax
import jax.numpy as jnp
from jax import lax
from jax.experimental import pallas as pl
from jax.experimental.pallas import tpu as pltpu


def _round_up(x, m):
    return ((x + m - 1) // m) * m


def _vmem_capacity_bytes():
    """Physical per-core VMEM; falls back to the smallest (v7x, 64 MiB)."""
    try:
        return int(pltpu.get_tpu_info().vmem_capacity_bytes)
    except Exception:
        return 64 * 1024 * 1024


def _make_kernel(radius, nsample, TP, N, D_pad, C8, Sg, include_xyz):
    r2 = float(radius) ** 2
    S = int(nsample)

    def _onehot_bf16(cond):
        # bool -> {0,1}: f32 select then a pack-cast (portable on all TPU gens)
        return jnp.where(cond, 1.0, 0.0).astype(jnp.bfloat16)

    def kernel(xyz_cm_ref, q_ref, tab_ref, out_ref):
        xyz_cm = xyz_cm_ref[0]       # (3, N)        f32  coordinate-major points
        q = q_ref[0]                 # (TP, 3)       f32  query centers
        tab = tab_ref[0]             # (N, 2*D_pad)  bf16 fused [hi | lo] table

        # ---- pairwise squared distances (TP, N), lane-dense, per coordinate
        dist2 = jnp.zeros((TP, N), jnp.float32)
        for c in range(3):
            d = q[:, c:c + 1] - xyz_cm[c:c + 1, :]            # (TP, N)
            dist2 = dist2 + d * d
        mask = dist2 < r2                                     # (TP, N) bool

        # ---- inclusive prefix sum along N: log2(N) shift+add scan
        #      (the scan is not the bottleneck; kept as concat+slice for
        #       portability instead of pltpu.roll)
        cum = mask.astype(jnp.float32)
        sh = 1
        while sh < N:
            cum = cum + jnp.concatenate(
                [jnp.zeros((TP, sh), jnp.float32), cum[:, :N - sh]], axis=-1)
            sh *= 2
        rank = cum.astype(jnp.int32) - 1                      # in-ball order
        cnt = cum[:, N - 1:N].astype(jnp.int32)               # (TP, 1) hit count

        # ---- fallback selector (CUDA rule: repeat first hit; index 0 if none)
        col0 = lax.broadcasted_iota(jnp.int32, (TP, N), 1) == 0
        fb_f = jnp.where(cnt > 0,
                         jnp.where(mask & (rank == 0), 1.0, 0.0),
                         jnp.where(col0, 1.0, 0.0))
        fb_sel = fb_f.astype(jnp.bfloat16)                    # (TP, N)

        def gather(w):
            # (rows, N) bf16 one-hot  x  (N, 2*D_pad) bf16 [hi|lo] -> f32
            res = jnp.dot(w, tab, preferred_element_type=jnp.float32)
            return res[:, :D_pad] + res[:, D_pad:2 * D_pad]   # (rows, D_pad)

        g_fb = gather(fb_sel)                                 # (TP, D_pad)

        if include_xyz:
            center = jnp.concatenate(
                [q, jnp.zeros((TP, D_pad - 3), jnp.float32)], axis=-1)

        # ---- one-hot MXU gather, chunked over nsample (Sg samples per call);
        #      selectors built directly in bf16, ball-query fallback blended
        #      after the matmul on the narrow (TP, D_pad) result.
        for c0 in range(0, S, Sg):
            ks = list(range(c0, min(c0 + Sg, S)))
            w = jnp.concatenate(
                [_onehot_bf16(mask & (rank == k)) for k in ks], axis=0)
            g = gather(w)                                     # (len(ks)*TP, D_pad)
            for i, k in enumerate(ks):
                gk = g[i * TP:(i + 1) * TP, :]                # (TP, D_pad)
                gk = jnp.where(cnt > k, gk, g_fb)             # pad rule, post-MXU
                if include_xyz:
                    gk = gk - center                          # relative coords
                # query points on the lane axis; only real channels get stored
                out_ref[0, k] = jnp.transpose(gk)[:C8, :]     # (C8, TP)

    return kernel


def query_and_group(xyz, new_xyz, features=None, *, radius, nsample, use_xyz=True):
    """Pallas equivalent of QueryAndGroup.forward -> (B, ch, P, nsample)."""
    xyz = jnp.asarray(xyz, jnp.float32)
    new_xyz = jnp.asarray(new_xyz, jnp.float32)
    has_feat = features is not None
    if not has_feat:
        assert use_xyz, "need xyz as features when no features are given"
    include_xyz = use_xyz or not has_feat

    B, N, _ = xyz.shape
    P = new_xyz.shape[1]
    C = features.shape[2] if has_feat else 0
    out_ch = (3 if include_xyz else 0) + C
    S = int(nsample)

    # ---- pre-center per batch: bf16 hi/lo error then scales with the cloud
    #      extent, not the absolute coordinates (relative-xyz cancellation).
    mean = jnp.mean(xyz, axis=1, keepdims=True)               # (B, 1, 3)
    xyz_c = xyz - mean
    new_xyz_c = new_xyz - mean

    # ---- fused lane-padded bf16 gather table: [ hi (D_pad) | lo (D_pad) ]
    D_pad = max(128, _round_up(out_ch, 128))
    parts = []
    if include_xyz:
        parts.append(xyz_c)
    if has_feat:
        parts.append(jnp.asarray(features, jnp.float32))
    if D_pad > out_ch:
        parts.append(jnp.zeros((B, N, D_pad - out_ch), jnp.float32))
    table = jnp.concatenate(parts, axis=-1)                   # (B, N, D_pad) f32
    t_hi = table.astype(jnp.bfloat16)
    t_lo = (table - t_hi.astype(jnp.float32)).astype(jnp.bfloat16)
    table_fused = jnp.concatenate([t_hi, t_lo], axis=-1)      # (B, N, 2*D_pad)

    # ---- coordinate-major xyz for the lane-dense distance computation
    xyz_cm = jnp.transpose(xyz_c, (0, 2, 1))                  # (B, 3, N)

    # ---- fixed, generation-aware query tile (no divisor search)
    vmem_cap = _vmem_capacity_bytes()
    TP_target = 256 if (vmem_cap >= (100 << 20) and N <= 2048) else 128
    P8 = _round_up(P, 8)
    TP = TP_target if P8 >= TP_target else P8
    P_pad = _round_up(P, TP)
    if P_pad != P:
        new_xyz_c = jnp.concatenate(
            [new_xyz_c, jnp.zeros((B, P_pad - P, 3), jnp.float32)], axis=1)

    Sg = min(S, max(1, -(-256 // TP)))        # samples per MXU call (>=256 rows)
    C8 = _round_up(out_ch, 8)                 # stored (sublane-padded) channels
    grid = (B, P_pad // TP)

    kernel = _make_kernel(radius, S, TP, N, D_pad, C8, Sg, include_xyz)

    # ---- VMEM budget from the actual working set, clamped to 3/4 of physical
    lane = lambda v: _round_up(v, 128)
    est = (2 * 8 * lane(N) * 4                     # xyz_cm block (x2 buffers)
           + 2 * TP * 128 * 4                      # query block   (x2 buffers)
           + 2 * _round_up(N, 8) * 2 * D_pad * 2   # fused bf16 table (x2)
           + 2 * S * C8 * TP * 4                   # output block  (x2 buffers)
           + 10 * TP * lane(N) * 4                 # (TP, N) f32 temporaries
           + (Sg + 1) * TP * lane(N) * 2           # bf16 selector chunk + fallback
           + 3 * (Sg + 1) * TP * 2 * D_pad * 4)    # matmul results / halves
    vmem_limit = min(max(int(est * 5 // 4) + (2 << 20), 32 << 20),
                     int(vmem_cap * 3 // 4))

    out_padded = pl.pallas_call(
        kernel,
        out_shape=jax.ShapeDtypeStruct((B, S, C8, P_pad), jnp.float32),
        grid=grid,
        in_specs=[
            pl.BlockSpec((1, 3, N), lambda b, j: (b, 0, 0)),          # resident
            pl.BlockSpec((1, TP, 3), lambda b, j: (b, j, 0)),
            pl.BlockSpec((1, N, 2 * D_pad), lambda b, j: (b, 0, 0)),  # resident
        ],
        out_specs=pl.BlockSpec((1, S, C8, TP), lambda b, j: (b, 0, 0, j)),
        compiler_params=pltpu.CompilerParams(
            dimension_semantics=("parallel", "parallel"),
            vmem_limit_bytes=vmem_limit),
    )(xyz_cm, new_xyz_c, table_fused)

    out = out_padded[:, :, :out_ch, :P]                        # (B, S, ch, P)
    return jnp.transpose(out, (0, 2, 3, 1))                    # (B, ch, P, S)


def _reference(xyz, new_xyz, features, radius, nsample, use_xyz=True):
    """Plain numpy replica of ball_query + group_points + QueryAndGroup."""
    xyz = np.asarray(xyz, np.float32)
    new_xyz = np.asarray(new_xyz, np.float32)
    feats = None if features is None else np.asarray(features, np.float32)
    B, N, _ = xyz.shape
    P = new_xyz.shape[1]
    C = 0 if feats is None else feats.shape[2]
    ch = (3 + C) if (use_xyz or feats is None) else C
    out = np.zeros((B, ch, P, nsample), np.float32)
    r2 = radius * radius
    for b in range(B):
        for i in range(P):
            idx = np.zeros(nsample, np.int64)
            cnt = 0
            for j in range(N):
                d2 = float(np.sum((new_xyz[b, i] - xyz[b, j]) ** 2))
                if d2 < r2:
                    if cnt == 0:
                        idx[:] = j
                    idx[cnt] = j
                    cnt += 1
                    if cnt == nsample:
                        break
            gxyz = xyz[b, idx] - new_xyz[b, i]                 # (nsample, 3)
            if feats is not None:
                gfeat = feats[b, idx]                          # (nsample, C)
                nf = np.concatenate([gxyz, gfeat], -1) if use_xyz else gfeat
            else:
                nf = gxyz
            out[b, :, i, :] = nf.T
    return out


if __name__ == "__main__":
    B, N, P, S, C = 2, 16, 8, 4, 4
    radius = 0.4

    key = jax.random.PRNGKey(0)
    kx, kf = jax.random.split(key)
    xyz = jax.random.uniform(kx, (B, N, 3), dtype=jnp.float32)
    new_xyz = xyz[:, :P, :]            # query centers are a subset of the points
    features = jax.random.normal(kf, (B, N, C), dtype=jnp.float32)

    # 1) features present, use_xyz=True
    out = query_and_group(xyz, new_xyz, features, radius=radius, nsample=S,
                          use_xyz=True)
    out = jax.block_until_ready(out)
    ref = _reference(xyz, new_xyz, features, radius, S, use_xyz=True)
    assert out.shape == (B, 3 + C, P, S), out.shape
    np.testing.assert_allclose(np.asarray(out), ref, atol=2e-4, rtol=2e-4)

    # 2) xyz-only path (features=None)
    out2 = query_and_group(xyz, new_xyz, None, radius=radius, nsample=S,
                           use_xyz=True)
    out2 = jax.block_until_ready(out2)
    ref2 = _reference(xyz, new_xyz, None, radius, S, use_xyz=True)
    assert out2.shape == (B, 3, P, S), out2.shape
    np.testing.assert_allclose(np.asarray(out2), ref2, atol=2e-4, rtol=2e-4)

    # 3) features present, use_xyz=False
    out3 = query_and_group(xyz, new_xyz, features, radius=radius, nsample=S,
                           use_xyz=False)
    out3 = jax.block_until_ready(out3)
    ref3 = _reference(xyz, new_xyz, features, radius, S, use_xyz=False)
    assert out3.shape == (B, C, P, S), out3.shape
    np.testing.assert_allclose(np.asarray(out3), ref3, atol=2e-4, rtol=2e-4)

    print("KERNEL_OK")
</pallas_src>

<mosaic_0001>
module attributes {stable_mosaic.version = 11 : i64} {
  func.func @kernel(%arg0: i32, %arg1: i32, %arg2: memref<1x3x16xf32, #tpu.memory_space<vmem>>, %arg3: memref<1x8x3xf32, #tpu.memory_space<vmem>>, %arg4: memref<1x16x256xbf16, #tpu.memory_space<vmem>>, %arg5: memref<1x4x8x8xf32, #tpu.memory_space<vmem>>) attributes {dimension_semantics = [#tpu.dimension_semantics<parallel>, #tpu.dimension_semantics<parallel>], iteration_bounds = array<i64: 2, 1>, scalar_prefetch = 0 : i64, scratch_operands = 0 : i64, tpu.core_type = #tpu.core_type<tc>, window_params = [{transform_indices = @transform_0, window_bounds = array<i64: 1, 3, 16>}, {transform_indices = @transform_1, window_bounds = array<i64: 1, 8, 3>}, {transform_indices = @transform_2, window_bounds = array<i64: 1, 16, 256>}, {transform_indices = @transform_3, window_bounds = array<i64: 1, 4, 8, 8>}]} {
    %c0 = arith.constant 0 : index
    %c0_0 = arith.constant 0 : index
    %c0_1 = arith.constant 0 : index
    %0 = vector.load %arg2[%c0, %c0_0, %c0_1] : memref<1x3x16xf32, #tpu.memory_space<vmem>>, vector<1x3x16xf32>
    %1 = vector.shape_cast %0 : vector<1x3x16xf32> to vector<3x16xf32>
    %c0_2 = arith.constant 0 : index
    %c0_3 = arith.constant 0 : index
    %c0_4 = arith.constant 0 : index
    %2 = vector.load %arg3[%c0_2, %c0_3, %c0_4] : memref<1x8x3xf32, #tpu.memory_space<vmem>>, vector<1x8x3xf32>
    %3 = vector.shape_cast %2 : vector<1x8x3xf32> to vector<8x3xf32>
    %c0_5 = arith.constant 0 : index
    %c0_6 = arith.constant 0 : index
    %c0_7 = arith.constant 0 : index
    %4 = vector.load %arg4[%c0_5, %c0_6, %c0_7] : memref<1x16x256xbf16, #tpu.memory_space<vmem>>, vector<1x16x256xbf16>
    %5 = vector.shape_cast %4 : vector<1x16x256xbf16> to vector<16x256xbf16>
    %cst = arith.constant 0.000000e+00 : f32
    %6 = vector.broadcast %cst : f32 to vector<8x16xf32>
    %7 = vector.extract_strided_slice %3 {offsets = [0, 0], sizes = [8, 1], strides = [1, 1]} : vector<8x3xf32> to vector<8x1xf32>
    %8 = vector.extract_strided_slice %1 {offsets = [0, 0], sizes = [1, 16], strides = [1, 1]} : vector<3x16xf32> to vector<1x16xf32>
    %9 = vector.broadcast %7 : vector<8x1xf32> to vector<8x16xf32>
    %10 = vector.broadcast %8 : vector<1x16xf32> to vector<8x16xf32>
    %11 = arith.subf %9, %10 : vector<8x16xf32>
    %12 = arith.mulf %11, %11 : vector<8x16xf32>
    %13 = arith.addf %6, %12 : vector<8x16xf32>
    %14 = vector.extract_strided_slice %3 {offsets = [0, 1], sizes = [8, 1], strides = [1, 1]} : vector<8x3xf32> to vector<8x1xf32>
    %15 = vector.extract_strided_slice %1 {offsets = [1, 0], sizes = [1, 16], strides = [1, 1]} : vector<3x16xf32> to vector<1x16xf32>
    %16 = vector.broadcast %14 : vector<8x1xf32> to vector<8x16xf32>
    %17 = vector.broadcast %15 : vector<1x16xf32> to vector<8x16xf32>
    %18 = arith.subf %16, %17 : vector<8x16xf32>
    %19 = arith.mulf %18, %18 : vector<8x16xf32>
    %20 = arith.addf %13, %19 : vector<8x16xf32>
    %21 = vector.extract_strided_slice %3 {offsets = [0, 2], sizes = [8, 1], strides = [1, 1]} : vector<8x3xf32> to vector<8x1xf32>
    %22 = vector.extract_strided_slice %1 {offsets = [2, 0], sizes = [1, 16], strides = [1, 1]} : vector<3x16xf32> to vector<1x16xf32>
    %23 = vector.broadcast %21 : vector<8x1xf32> to vector<8x16xf32>
    %24 = vector.broadcast %22 : vector<1x16xf32> to vector<8x16xf32>
    %25 = arith.subf %23, %24 : vector<8x16xf32>
    %26 = arith.mulf %25, %25 : vector<8x16xf32>
    %27 = arith.addf %20, %26 : vector<8x16xf32>
    %cst_8 = arith.constant 1.600000e-01 : f32
    %28 = vector.broadcast %cst_8 : f32 to vector<8x16xf32>
    %29 = arith.cmpf olt, %27, %28 : vector<8x16xf32>
    %30 = arith.extui %29 : vector<8x16xi1> to vector<8x16xi32>
    %31 = arith.sitofp %30 : vector<8x16xi32> to vector<8x16xf32>
    %cst_9 = arith.constant 0.000000e+00 : f32
    %32 = vector.broadcast %cst_9 : f32 to vector<8x1xf32>
    %33 = vector.extract_strided_slice %31 {offsets = [0, 0], sizes = [8, 15], strides = [1, 1]} : vector<8x16xf32> to vector<8x15xf32>
    %34 = tpu.concatenate %32, %33 in 1 : vector<8x1xf32>, vector<8x15xf32> -> vector<8x16xf32>
    %35 = arith.addf %31, %34 : vector<8x16xf32>
    %cst_10 = arith.constant 0.000000e+00 : f32
    %36 = vector.broadcast %cst_10 : f32 to vector<8x2xf32>
    %37 = vector.extract_strided_slice %35 {offsets = [0, 0], sizes = [8, 14], strides = [1, 1]} : vector<8x16xf32> to vector<8x14xf32>
    %38 = tpu.concatenate %36, %37 in 1 : vector<8x2xf32>, vector<8x14xf32> -> vector<8x16xf32>
    %39 = arith.addf %35, %38 : vector<8x16xf32>
    %cst_11 = arith.constant 0.000000e+00 : f32
    %40 = vector.broadcast %cst_11 : f32 to vector<8x4xf32>
    %41 = vector.extract_strided_slice %39 {offsets = [0, 0], sizes = [8, 12], strides = [1, 1]} : vector<8x16xf32> to vector<8x12xf32>
    %42 = tpu.concatenate %40, %41 in 1 : vector<8x4xf32>, vector<8x12xf32> -> vector<8x16xf32>
    %43 = arith.addf %39, %42 : vector<8x16xf32>
    %cst_12 = arith.constant 0.000000e+00 : f32
    %44 = vector.broadcast %cst_12 : f32 to vector<8x8xf32>
    %45 = vector.extract_strided_slice %43 {offsets = [0, 0], sizes = [8, 8], strides = [1, 1]} : vector<8x16xf32> to vector<8x8xf32>
    %46 = tpu.concatenate %44, %45 in 1 : vector<8x8xf32>, vector<8x8xf32> -> vector<8x16xf32>
    %47 = arith.addf %43, %46 : vector<8x16xf32>
    %48 = arith.fptosi %47 : vector<8x16xf32> to vector<8x16xi32>
    %c1_i32 = arith.constant 1 : i32
    %49 = vector.broadcast %c1_i32 : i32 to vector<8x16xi32>
    %50 = arith.subi %48, %49 : vector<8x16xi32>
    %51 = vector.extract_strided_slice %47 {offsets = [0, 15], sizes = [8, 1], strides = [1, 1]} : vector<8x16xf32> to vector<8x1xf32>
    %52 = arith.fptosi %51 : vector<8x1xf32> to vector<8x1xi32>
    %53 = tpu.iota {dimensions = array<i32: 1>} : vector<8x16xi32>
    %c0_i32 = arith.constant 0 : i32
    %54 = vector.broadcast %c0_i32 : i32 to vector<8x16xi32>
    %55 = arith.cmpi eq, %53, %54 : vector<8x16xi32>
    %c0_i32_13 = arith.constant 0 : i32
    %56 = vector.broadcast %c0_i32_13 : i32 to vector<8x1xi32>
    %57 = arith.cmpi sgt, %52, %56 : vector<8x1xi32>
    %c0_i32_14 = arith.constant 0 : i32
    %58 = vector.broadcast %c0_i32_14 : i32 to vector<8x16xi32>
    %59 = arith.cmpi eq, %50, %58 : vector<8x16xi32>
    %60 = arith.andi %29, %59 : vector<8x16xi1>
    %cst_15 = arith.constant 1.000000e+00 : f32
    %cst_16 = arith.constant 0.000000e+00 : f32
    %61 = vector.broadcast %cst_15 : f32 to vector<8x16xf32>
    %62 = vector.broadcast %cst_16 : f32 to vector<8x16xf32>
    %63 = arith.select %60, %61, %62 : vector<8x16xi1>, vector<8x16xf32>
    %cst_17 = arith.constant 1.000000e+00 : f32
    %cst_18 = arith.constant 0.000000e+00 : f32
    %64 = vector.broadcast %cst_17 : f32 to vector<8x16xf32>
    %65 = vector.broadcast %cst_18 : f32 to vector<8x16xf32>
    %66 = arith.select %55, %64, %65 : vector<8x16xi1>, vector<8x16xf32>
    %67 = vector.shape_cast %57 : vector<8x1xi1> to vector<8x1xi1>
    %68 = vector.broadcast %67 : vector<8x1xi1> to vector<8x16xi1>
    %69 = arith.select %68, %63, %66 : vector<8x16xi1>, vector<8x16xf32>
    %70 = arith.truncf %69 : vector<8x16xf32> to vector<8x16xbf16>
    %cst_19 = arith.constant dense<0.000000e+00> : vector<8x256xf32>
    %71 = tpu.matmul %70, %5, %cst_19 {dimension_numbers = #tpu.dot_dimension_numbers<[1], [0], [0], [1], [0, 0, 1, 1], [], []>} : vector<8x16xbf16>, vector<16x256xbf16>, vector<8x256xf32> -> vector<8x256xf32>
    %72 = vector.extract_strided_slice %71 {offsets = [0, 0], sizes = [8, 128], strides = [1, 1]} : vector<8x256xf32> to vector<8x128xf32>
    %73 = vector.extract_strided_slice %71 {offsets = [0, 128], sizes = [8, 128], strides = [1, 1]} : vector<8x256xf32> to vector<8x128xf32>
    %74 = arith.addf %72, %73 : vector<8x128xf32>
    %cst_20 = arith.constant 0.000000e+00 : f32
    %75 = vector.broadcast %cst_20 : f32 to vector<8x125xf32>
    %76 = tpu.concatenate %3, %75 in 1 : vector<8x3xf32>, vector<8x125xf32> -> vector<8x128xf32>
    %c0_i32_21 = arith.constant 0 : i32
    %77 = vector.broadcast %c0_i32_21 : i32 to vector<8x16xi32>
    %78 = arith.cmpi eq, %50, %77 : vector<8x16xi32>
    %79 = arith.andi %29, %78 : vector<8x16xi1>
    %cst_22 = arith.constant 1.000000e+00 : f32
    %cst_23 = arith.constant 0.000000e+00 : f32
    %80 = vector.broadcast %cst_22 : f32 to vector<8x16xf32>
    %81 = vector.broadcast %cst_23 : f32 to vector<8x16xf32>
    %82 = arith.select %79, %80, %81 : vector<8x16xi1>, vector<8x16xf32>
    %83 = arith.truncf %82 : vector<8x16xf32> to vector<8x16xbf16>
    %c1_i32_24 = arith.constant 1 : i32
    %84 = vector.broadcast %c1_i32_24 : i32 to vector<8x16xi32>
    %85 = arith.cmpi eq, %50, %84 : vector<8x16xi32>
    %86 = arith.andi %29, %85 : vector<8x16xi1>
    %cst_25 = arith.constant 1.000000e+00 : f32
    %cst_26 = arith.constant 0.000000e+00 : f32
    %87 = vector.broadcast %cst_25 : f32 to vector<8x16xf32>
    %88 = vector.broadcast %cst_26 : f32 to vector<8x16xf32>
    %89 = arith.select %86, %87, %88 : vector<8x16xi1>, vector<8x16xf32>
    %90 = arith.truncf %89 : vector<8x16xf32> to vector<8x16xbf16>
    %c2_i32 = arith.constant 2 : i32
    %91 = vector.broadcast %c2_i32 : i32 to vector<8x16xi32>
    %92 = arith.cmpi eq, %50, %91 : vector<8x16xi32>
    %93 = arith.andi %29, %92 : vector<8x16xi1>
    %cst_27 = arith.constant 1.000000e+00 : f32
    %cst_28 = arith.constant 0.000000e+00 : f32
    %94 = vector.broadcast %cst_27 : f32 to vector<8x16xf32>
    %95 = vector.broadcast %cst_28 : f32 to vector<8x16xf32>
    %96 = arith.select %93, %94, %95 : vector<8x16xi1>, vector<8x16xf32>
    %97 = arith.truncf %96 : vector<8x16xf32> to vector<8x16xbf16>
    %c3_i32 = arith.constant 3 : i32
    %98 = vector.broadcast %c3_i32 : i32 to vector<8x16xi32>
    %99 = arith.cmpi eq, %50, %98 : vector<8x16xi32>
    %100 = arith.andi %29, %99 : vector<8x16xi1>
    %cst_29 = arith.constant 1.000000e+00 : f32
    %cst_30 = arith.constant 0.000000e+00 : f32
    %101 = vector.broadcast %cst_29 : f32 to vector<8x16xf32>
    %102 = vector.broadcast %cst_30 : f32 to vector<8x16xf32>
    %103 = arith.select %100, %101, %102 : vector<8x16xi1>, vector<8x16xf32>
    %104 = arith.truncf %103 : vector<8x16xf32> to vector<8x16xbf16>
    %105 = tpu.concatenate %83, %90, %97, %104 in 0 : vector<8x16xbf16>, vector<8x16xbf16>, vector<8x16xbf16>, vector<8x16xbf16> -> vector<32x16xbf16>
    %cst_31 = arith.constant dense<0.000000e+00> : vector<32x256xf32>
    %106 = tpu.matmul %105, %5, %cst_31 {dimension_numbers = #tpu.dot_dimension_numbers<[1], [0], [0], [1], [0, 0, 1, 1], [], []>} : vector<32x16xbf16>, vector<16x256xbf16>, vector<32x256xf32> -> vector<32x256xf32>
    %107 = vector.extract_strided_slice %106 {offsets = [0, 0], sizes = [32, 128], strides = [1, 1]} : vector<32x256xf32> to vector<32x128xf32>
    %108 = vector.extract_strided_slice %106 {offsets = [0, 128], sizes = [32, 128], strides = [1, 1]} : vector<32x256xf32> to vector<32x128xf32>
    %109 = arith.addf %107, %108 : vector<32x128xf32>
    %110 = vector.extract_strided_slice %109 {offsets = [0, 0], sizes = [8, 128], strides = [1, 1]} : vector<32x128xf32> to vector<8x128xf32>
    %c0_i32_32 = arith.constant 0 : i32
    %111 = vector.broadcast %c0_i32_32 : i32 to vector<8x1xi32>
    %112 = arith.cmpi sgt, %52, %111 : vector<8x1xi32>
    %113 = vector.shape_cast %112 : vector<8x1xi1> to vector<8x1xi1>
    %114 = vector.broadcast %113 : vector<8x1xi1> to vector<8x128xi1>
    %115 = arith.select %114, %110, %74 : vector<8x128xi1>, vector<8x128xf32>
    %116 = arith.subf %115, %76 : vector<8x128xf32>
    %117 = tpu.transpose %116, [1, 0] : vector<8x128xf32> -> vector<128x8xf32>
    %118 = vector.extract_strided_slice %117 {offsets = [0, 0], sizes = [8, 8], strides = [1, 1]} : vector<128x8xf32> to vector<8x8xf32>
    %c0_33 = arith.constant 0 : index
    %c0_34 = arith.constant 0 : index
    %c0_35 = arith.constant 0 : index
    %c0_36 = arith.constant 0 : index
    %119 = vector.load %arg5[%c0_33, %c0_34, %c0_35, %c0_36] : memref<1x4x8x8xf32, #tpu.memory_space<vmem>>, vector<1x1x8x8xf32>
    %120 = vector.shape_cast %119 : vector<1x1x8x8xf32> to vector<8x8xf32>
    %121 = vector.shape_cast %118 : vector<8x8xf32> to vector<1x1x8x8xf32>
    tpu.vector_store %arg5[%c0_33, %c0_34, %c0_35, %c0_36], %121 {strides = array<i32>} : memref<1x4x8x8xf32, #tpu.memory_space<vmem>>, vector<1x1x8x8xf32>,
    %122 = vector.extract_strided_slice %109 {offsets = [8, 0], sizes = [8, 128], strides = [1, 1]} : vector<32x128xf32> to vector<8x128xf32>
    %c1_i32_37 = arith.constant 1 : i32
    %123 = vector.broadcast %c1_i32_37 : i32 to vector<8x1xi32>
    %124 = arith.cmpi sgt, %52, %123 : vector<8x1xi32>
    %125 = vector.shape_cast %124 : vector<8x1xi1> to vector<8x1xi1>
    %126 = vector.broadcast %125 : vector<8x1xi1> to vector<8x128xi1>
    %127 = arith.select %126, %122, %74 : vector<8x128xi1>, vector<8x128xf32>
    %128 = arith.subf %127, %76 : vector<8x128xf32>
    %129 = tpu.transpose %128, [1, 0] : vector<8x128xf32> -> vector<128x8xf32>
    %130 = vector.extract_strided_slice %129 {offsets = [0, 0], sizes = [8, 8], strides = [1, 1]} : vector<128x8xf32> to vector<8x8xf32>
    %c0_38 = arith.constant 0 : index
    %c1 = arith.constant 1 : index
    %c0_39 = arith.constant 0 : index
    %c0_40 = arith.constant 0 : index
    %131 = vector.load %arg5[%c0_38, %c1, %c0_39, %c0_40] : memref<1x4x8x8xf32, #tpu.memory_space<vmem>>, vector<1x1x8x8xf32>
    %132 = vector.shape_cast %131 : vector<1x1x8x8xf32> to vector<8x8xf32>
    %133 = vector.shape_cast %130 : vector<8x8xf32> to vector<1x1x8x8xf32>
    tpu.vector_store %arg5[%c0_38, %c1, %c0_39, %c0_40], %133 {strides = array<i32>} : memref<1x4x8x8xf32, #tpu.memory_space<vmem>>, vector<1x1x8x8xf32>,
    %134 = vector.extract_strided_slice %109 {offsets = [16, 0], sizes = [8, 128], strides = [1, 1]} : vector<32x128xf32> to vector<8x128xf32>
    %c2_i32_41 = arith.constant 2 : i32
    %135 = vector.broadcast %c2_i32_41 : i32 to vector<8x1xi32>
    %136 = arith.cmpi sgt, %52, %135 : vector<8x1xi32>
    %137 = vector.shape_cast %136 : vector<8x1xi1> to vector<8x1xi1>
    %138 = vector.broadcast %137 : vector<8x1xi1> to vector<8x128xi1>
    %139 = arith.select %138, %134, %74 : vector<8x128xi1>, vector<8x128xf32>
    %140 = arith.subf %139, %76 : vector<8x128xf32>
    %141 = tpu.transpose %140, [1, 0] : vector<8x128xf32> -> vector<128x8xf32>
    %142 = vector.extract_strided_slice %141 {offsets = [0, 0], sizes = [8, 8], strides = [1, 1]} : vector<128x8xf32> to vector<8x8xf32>
    %c0_42 = arith.constant 0 : index
    %c2 = arith.constant 2 : index
    %c0_43 = arith.constant 0 : index
    %c0_44 = arith.constant 0 : index
    %143 = vector.load %arg5[%c0_42, %c2, %c0_43, %c0_44] : memref<1x4x8x8xf32, #tpu.memory_space<vmem>>, vector<1x1x8x8xf32>
    %144 = vector.shape_cast %143 : vector<1x1x8x8xf32> to vector<8x8xf32>
    %145 = vector.shape_cast %142 : vector<8x8xf32> to vector<1x1x8x8xf32>
    tpu.vector_store %arg5[%c0_42, %c2, %c0_43, %c0_44], %145 {strides = array<i32>} : memref<1x4x8x8xf32, #tpu.memory_space<vmem>>, vector<1x1x8x8xf32>,
    %146 = vector.extract_strided_slice %109 {offsets = [24, 0], sizes = [8, 128], strides = [1, 1]} : vector<32x128xf32> to vector<8x128xf32>
    %c3_i32_45 = arith.constant 3 : i32
    %147 = vector.broadcast %c3_i32_45 : i32 to vector<8x1xi32>
    %148 = arith.cmpi sgt, %52, %147 : vector<8x1xi32>
    %149 = vector.shape_cast %148 : vector<8x1xi1> to vector<8x1xi1>
    %150 = vector.broadcast %149 : vector<8x1xi1> to vector<8x128xi1>
    %151 = arith.select %150, %146, %74 : vector<8x128xi1>, vector<8x128xf32>
    %152 = arith.subf %151, %76 : vector<8x128xf32>
    %153 = tpu.transpose %152, [1, 0] : vector<8x128xf32> -> vector<128x8xf32>
    %154 = vector.extract_strided_slice %153 {offsets = [0, 0], sizes = [8, 8], strides = [1, 1]} : vector<128x8xf32> to vector<8x8xf32>
    %c0_46 = arith.constant 0 : index
    %c3 = arith.constant 3 : index
    %c0_47 = arith.constant 0 : index
    %c0_48 = arith.constant 0 : index
    %155 = vector.load %arg5[%c0_46, %c3, %c0_47, %c0_48] : memref<1x4x8x8xf32, #tpu.memory_space<vmem>>, vector<1x1x8x8xf32>
    %156 = vector.shape_cast %155 : vector<1x1x8x8xf32> to vector<8x8xf32>
    %157 = vector.shape_cast %154 : vector<8x8xf32> to vector<1x1x8x8xf32>
    tpu.vector_store %arg5[%c0_46, %c3, %c0_47, %c0_48], %157 {strides = array<i32>} : memref<1x4x8x8xf32, #tpu.memory_space<vmem>>, vector<1x1x8x8xf32>,
    return
  }
  func.func @transform_0(%arg0: i32, %arg1: i32) -> (i32, i32, i32) {
    %c0_i32 = arith.constant 0 : i32
    %c0_i32_0 = arith.constant 0 : i32
    %c0_i32_1 = arith.constant 0 : i32
    return %arg0, %c0_i32, %c0_i32_0 : i32, i32, i32
  }
  func.func @transform_1(%arg0: i32, %arg1: i32) -> (i32, i32, i32) {
    %c0_i32 = arith.constant 0 : i32
    %c0_i32_0 = arith.constant 0 : i32
    return %arg0, %arg1, %c0_i32 : i32, i32, i32
  }
  func.func @transform_2(%arg0: i32, %arg1: i32) -> (i32, i32, i32) {
    %c0_i32 = arith.constant 0 : i32
    %c0_i32_0 = arith.constant 0 : i32
    %c0_i32_1 = arith.constant 0 : i32
    return %arg0, %c0_i32, %c0_i32_0 : i32, i32, i32
  }
  func.func @transform_3(%arg0: i32, %arg1: i32) -> (i32, i32, i32, i32) {
    %c0_i32 = arith.constant 0 : i32
    %c0_i32_0 = arith.constant 0 : i32
    %c0_i32_1 = arith.constant 0 : i32
    return %arg0, %c0_i32, %c0_i32_0, %arg1 : i32, i32, i32, i32
  }
}

</mosaic_0001>

<bundles_post_ra>
// kernel: tpu_custom_call.1
= control target key start
LH: loop header
LB: loop body
LE: loop exit
PB: predicated region body
PF: predicated region fallthrough
CT: control target
= control target key end

     0   :  { %8 = vsyncpa [#allocation3], 0  ;;  %s1120_s0 = inlined_call_operand.vmem [shape: f32[2,3,16], index: 0, kind: input, shape index: {}]   ;;  %s1121_s1 = inlined_call_operand.vmem [shape: f32[2,8,3], index: 1, kind: input, shape index: {}]   ;;  %s1122_s2 = inlined_call_operand.vmem [shape: bf16[2,16,256], index: 2, kind: input, shape index: {}]   ;;  %s1123_s3 = inlined_call_operand.hbm [shape: f32[2,4,8,8], index: 3, kind: output, shape index: {}]  }
   0x1   :  { %10 = vsyncpa [#allocation3 + $0x1], 0  ;;  %s945_s12 = smov 0   ;;  %s947_s13 = smov 0  }
   0x2   :  { %s949_s14 = smov 0   ;;  %s951_s15 = smov 0  }
   0x3   :  { %s953_s16 = smov 0   ;;  %s955_s17 = smov 0  }
   0x4 LB: > { %s733_s18 = sadd.s32 4294967295, %s912_s17   ;;  %s734_s19 = sadd.s32 4294967294, %s912_s17   ;;  %s912_s17 = sphi %s955_s17, %s16_s17   ;;  %s908_s16 = sphi %s953_s16, %s1130_s16   ;;  %s904_s15 = sphi %s951_s15, %s1129_s15   ;;  %s900_s14 = sphi %s949_s14, %s1128_s14   ;;  %s896_s13 = sphi %s947_s13, %s1127_s13   ;;  %s892_s12 = sphi %s945_s12, %s1126_s12  }
   0x5   : > { %s28_s20 = sadd.s32 1, %s908_s16  ;;  %s117_s21 = sadd.s32 1, %s900_s14 }
   0x6   : > { %p30_p0 = scmp.ge.s32.totalorder %s28_s20, 2  ;;  %p127_p1 = scmp.ne.s32.totalorder %s900_s14, %s896_s13 }
   0x7   : > { %p128_p2 = scmp.eq.s32.totalorder %s733_s18, 1  ;;  %p133_p3 = scmp.ne.s32.totalorder %s896_s13, %s892_s12 }
   0x8   : > { %s1132_s20 = smov (%p30_p0, %s28_s20), 0  ;;  %p134_p5 = scmp.eq.s32.totalorder %s734_s19, 1 }
   0x9   : > { %p985_p4 = por %p128_p2, %p127_p1  ;;  %s112_s23 = ssub.s32 %s908_s16, %s1132_s20 }
   0xa   : > { %p737_p6 = scmp.ge.s32.totalorder %s912_s17, 1  ;;  %p115_p7 = scmp.eq.s32.totalorder %s112_s23, 0 }
   0xb   : > { %p992_p8 = por %p134_p5, %p133_p3  ;;  %p177_p9 = scmp.lt.s32.totalorder %s912_s17, 3 }
   0xc   : > { %s998_s25 = scalar_select %p115_p7, %s900_s14, %s117_s21  }
   0xd   : > { %p178_p10 = pnand %p737_p6, %p177_p9 }
   0xe   : > { %p212_p11 = scmp.lt.s32.totalorder (!%p178_p10), %s904_s15, 1  ;;  %v914_v0 = vmov (!%p178_p10), 0   ;;  %v915_v1 = vmov (!%p178_p10), 2   ;;  %v916_v3 = vmov (!%p178_p10), 1   ;;  %v238_v4 = vlaneseq (!%p178_p10)  ;;  %s918_s8 = smov (!%p178_p10), 1  }
   0xf   : > { %181 = sbr.rel (%p178_p10) target bundleno = 1150 (0x47e), region = 32  ;;  %827 = vset.pattern.permute.xlu0 (!%p178_p10), %v914_v0  ;;  %829 = vset.pattern.permute.xlu1 (!%p178_p10), %v915_v1  ;;  %v917_v24 = vmov (!%p178_p10), 0.0   ;;  %vm274_vm1 = vcmask (!%p178_p10), 7168   ;;  %s919_s9 = smov (!%p178_p10), 2   ;;  %vm281_vm2 = vcmask (!%p178_p10), 15360   ;;  %vm288_vm3 = vcmask (!%p178_p10), 31744  }
  0x10   : > { %433 = vmatprep.mubr.bf16.mxu1 (!%p178_p10), %v914_v0  ;;  %361 = vmatprep.mubr.bf16.mxu0 (!%p178_p10), %v914_v0  ;;  %v239_v5 = vshrl.u32 (!%p178_p10), %v238_v4, 7  ;;  %s920_s10 = smov (!%p178_p10), 4   ;;  %v921_v32 = vmov (!%p178_p10), 15   ;;  %s922_s23 = smov (!%p178_p10), 8   ;;  %vm295_vm4 = vcmask (!%p178_p10), 64512   ;;  %vm390_vm14 = vcmask (!%p178_p10), 1043456  }
  0x11   : > { %v301_v60 = vand.u32 (!%p178_p10), 127, %v238_v4 }
  0x12   : > { %v240_v6 = vsub.s32 (!%p178_p10), 0, %v239_v5  ;;  %v262_v7 = vsub.s32 (!%p178_p10), 2, %v239_v5  ;;  %v251_v9 = vsub.s32 (!%p178_p10), 1, %v239_v5 }
  0x16   : > { %s1003_s26 = scalar_select %p212_p11, %s904_s15, 1 }
  0x18   : > { %s740_s27 = sshll.u32 %s1003_s26, 3  ;;  %s739_s4 = sshll.u32 %s1003_s26, 2 }
  0x19   : > { %s222_s30 = scalar_lea.vmem %s1121_s1, %s740_s27  ;;  %s215_s7 = scalar_lea.vmem %s1120_s0, %s739_s4 }
  0x1a   : > { %v1011_v2 = vld [vmem:[%s222_s30] sm:$0xff]  ;;  %s758_s11 = sshll.u32 %s1003_s26, 4  ;;  %s209_s26 = sand.u32 1, %s896_s13  }
  0x1b   : > { %235 = vperm.xlu0 %827, %v1011_v2   ;;  %257 = vperm.xlu1 %829, %v1011_v2   ;;  %v229_v8 = vld [vmem:[%s215_s7] sm:$0x7]  ;;  %s227_s21 = scalar_lea.vmem %s1122_s2, %s758_s11  ;;  %s738_s27 = sshll.u32 %s209_s26, 5 }
  0x1c   : > { %v241_v11 = vrot.slane %v229_v8, %v240_v6  ;;  %v263_v12 = vrot.slane %v229_v8, %v262_v7  ;;  %v252_v14 = vrot.slane %v229_v8, %v251_v9  ;;  %v831_v36 = vld [vmem:[%s227_s21 + $0x4] ss:$8 sps:$4 sm:$0xff]   ;;  %v833_v37 = vld [vmem:[%s227_s21] ss:$8 sps:$4 sm:$0xff]   ;;  %s211_s28 = scalar_lea.vmem [#allocation2], %s738_s27  ;;  %s759_s30 = sshll.u32 %s904_s15, 9 }
  0x1d   : > { %401 = vmatprep.subr.bf16.mxu1 %v831_v36  ;;  %329 = vmatprep.subr.bf16.mxu0 %v831_v36  ;;  %s634_s29 = sshll.u32 %s211_s28, 4  ;;  %s1070_s6 = scalar_lea.hbm %s1123_s3, %s759_s30  ;;  %s1065_s29 = int_to_ptr.vmem [resolvable:$true] %s634_s29 }
  0x1e   : > { %402 = vmatpush1.bf16.msra.mxu1 %v833_v37  ;;  %330 = vmatpush1.bf16.msra.mxu0 %v833_v37  ;;  %s1073_s7 = scalar_lea.sflag [#allocation3], %s209_s26  ;;  %s923_s15 = smov [#allocation2]  }
  0x1f   : > { %828 = vset.pattern.permute.xlu0 %v916_v3 }
  0x20   : > { %246 = vperm.xlu0 %828, %v1011_v2  }
  0x24   : > { %830 = vset.pattern.permute.xlu0 %v921_v32 }
  0x9a   : > { %v236_v10 = vpop.permute.xlu0 %235  ;;  %v258_v13 = vpop.permute.xlu1 %257 }
  0x9b   : > { %v242_v15 = vsub.f32 %v236_v10, %v241_v11  ;;  %v264_v16 = vsub.f32 %v258_v13, %v263_v12 }
  0x9d   : > { %v243_v19 = vmul.f32 %v242_v15, %v242_v15  ;;  %v265_v21 = vmul.f32 %v264_v16, %v264_v16 }
  0x9f   : > { %v247_v17 = vpop.permute.xlu0 %246 }
  0xa0   : > { %v253_v18 = vsub.f32 %v247_v17, %v252_v14 }
  0xa2   : > { %v254_v20 = vmul.f32 %v253_v18, %v253_v18 }
  0xa4   : > { %v255_v22 = vadd.f32 %v254_v20, %v243_v19 }
  0xa6   : > { %v1021_v23 = vadd.f32 %v265_v21, %v255_v22 }
  0xa8   : > { %vm267_vm0 = vcmp.lt.f32.partialorder %v1021_v23, 0.16 }
  0xa9   : > { %v743_v25 = vsel %vm267_vm0, 1.0, %v917_v24 }
  0xaa   : > { %271 = vrot.lane.b32.xlu1 %v743_v25, %s918_s8  ;;  %s834_s8 = scalar_lea.vmem %s1065_s29, 512 }
  0xab   : > { %p835_p12 = scmp.ne.s32.totalorder %s1065_s29, %s834_s8 }
  0xad   : > { %p836_p13 = pnand %p835_p12, %p985_p4 }
  0xaf   : > { %p837_p0 = pneg %p836_p13 }
 0x11c   : > { %v272_v26 = vpop.permute.xlu1 %271 }
 0x11d   : > { %v275_v27 = vsel %vm274_vm1, 0.0, %v272_v26  ;;  %vm325_vm1 = vcmask 130048  }
 0x11e   : > { %v276_v28 = vadd.f32 %v743_v25, %v275_v27 }
 0x120   : > { %278 = vrot.lane.b32.xlu1 %v276_v28, %s919_s9  ;;  %s838_s9 = sshll.u32 %s923_s15, 4  ;;  %s839_s9 = int_to_ptr.vmem [resolvable:$false] %s838_s9 }
 0x121   : > { %p841_p1 = scmp.lt.s32.totalorder %s1065_s29, %s839_s9 }
 0x192   : > { %v279_v29 = vpop.permute.xlu1 %278 }
 0x193   : > { %v282_v30 = vsel %vm281_vm2, 0.0, %v279_v29 }
 0x194   : > { %v283_v31 = vadd.f32 %v282_v30, %v276_v28 }
 0x196   : > { %285 = vrot.lane.b32.xlu0 %v283_v31, %s920_s10  ;;  %s840_s10 = scalar_lea.vmem %s839_s9, 1024 }
 0x197   : > { %p842_p2 = scmp.lt.s32.totalorder %s840_s10, %s834_s8 }
 0x199   : > { %p843_p3 = por %p842_p2, %p841_p1 }
 0x19b   : > { %p844_p5 = pnand %p843_p3, %p837_p0 }
 0x208   : > { %v286_v33 = vpop.permute.xlu0 %285 }
 0x209   : > { %v289_v34 = vsel %vm288_vm3, 0.0, %v286_v33 }
 0x20a   : > { %v290_v35 = vadd.f32 %v289_v34, %v283_v31 }
 0x20c   : > { %292 = vrot.lane.b32.xlu1 %v290_v35, %s922_s23 }
 0x27e   : > { %v293_v38 = vpop.permute.xlu1 %292 }
 0x27f   : > { %v296_v39 = vsel %vm295_vm4, 0.0, %v293_v38 }
 0x280   : > { %v297_v40 = vadd.f32 %v296_v39, %v290_v35 }
 0x282   : > { %v760_v41 = vtrunc.f32 %v297_v40 }
 0x284   : > { %v761_v42 = vcvt.f32.s32 %v760_v41 }
 0x286   : > { %v744_v43 = vadd.s32 4294967295, %v761_v42  ;;  %vm303_vm5 = vcmp.gt.s32.totalorder %v761_v42, 0  ;;  %vm493_vm6 = vcmp.gt.s32.totalorder %v761_v42, 1  ;;  %vm535_vm12 = vcmp.gt.s32.totalorder %v761_v42, 2 }
 0x287   : > { %v308_v44 = vsel %vm303_vm5, 1, %v914_v0  ;;  %v494_v45 = vsel %vm493_vm6, 1, %v914_v0  ;;  %v536_v52 = vsel %vm535_vm12, 1, %v914_v0  ;;  %vm577_vm2 = vcmp.gt.s32.totalorder %v761_v42, 3 }
 0x288   : > { %310 = vperm.xlu0 %830, %v308_v44   ;;  %vm304_vm7 = vcmp.eq.s32.totalorder %v744_v43, 0  ;;  %vm374_vm8 = vcmp.eq.s32.totalorder %v744_v43, 1  ;;  %vm382_vm10 = vcmp.eq.s32.totalorder %v744_v43, 3  ;;  %vm378_vm15 = vcmp.eq.s32.totalorder %v744_v43, 2 }
 0x289   : > { %vm305_vm9 = vmand %vm267_vm0, %vm304_vm7  ;;  %v578_v55 = vsel %vm577_vm2, 1, %v914_v0  ;;  %vm302_vm5 = vcmp.eq.s32.totalorder %v301_v60, 0  ;;  %vm371_vm6 = vcmask 23552  }
 0x28a   : > { %vm375_vm11 = vmand %vm267_vm0, %vm374_vm8  ;;  %v306_v46 = vsel %vm305_vm9, 1.0, %v917_v24  ;;  %v307_v61 = vsel %vm302_vm5, 1.0, %v917_v24  ;;  %v372_v19 = vsel %vm371_vm6, %v1011_v2, 0.0 }
 0x28b   : > { %v376_v47 = vsel %vm375_vm11, 1.0, %v917_v24  ;;  %vm383_vm13 = vmand %vm267_vm0, %vm382_vm10  ;;  %v373_v50 = vpack.c.bf16 %v306_v46, %v306_v46 }
 0x28c   : > { %496 = vperm.xlu0 %830, %v494_v45   ;;  %v377_v48 = vpack.c.bf16 %v376_v47, %v376_v47  ;;  %v384_v49 = vsel %vm383_vm13, 1.0, %v917_v24  ;;  %vm379_vm3 = vmand %vm267_vm0, %vm378_vm15 }
 0x28d   : > { %v385_v54 = vpack.c.bf16 %v384_v49, %v384_v49  ;;  %v380_v56 = vsel %vm379_vm3, 1.0, %v917_v24 }
 0x28e   : > { %v387_v51 = vrot.slane %v377_v48, 4  ;;  %v381_v58 = vpack.c.bf16 %v380_v56, %v380_v56 }
 0x28f   : > { %v389_v57 = vrot.slane %v385_v54, 4 }
 0x290   : > { %538 = vperm.xlu0 %830, %v536_v52   ;;  %v393_v53 = vsel %vm390_vm14, %v373_v50, %v387_v51 }
 0x291   : > { %748 = vmatmul.mubr.msk.bf16.vlgmr.msra.gmra.mrb[0].mxu1 %vm325_vm1, %v393_v53  ;;  %v396_v59 = vsel %vm390_vm14, %v381_v58, %v389_v57 }
 0x292   : > { %443 = vmatprep.mubr.bf16.mxu1 %v914_v0 }
 0x294   : > { %580 = vperm.xlu0 %830, %v578_v55  }
 0x299   : > { %749 = vmatmul.mubr.msk.bf16.gmra.mrb[4].mxu1 %vm325_vm1, %v396_v59 }
 0x307   : > { %v311_v62 = vpop.permute.xlu0 %310 }
 0x308   : > { %vm312_vm0 = vcmp.eq.s32.totalorder %v311_v62, 1 }
 0x309   : > { %v313_v63 = vsel %vm312_vm0, %v306_v46, %v307_v61 }
 0x30a   : > { %v314_v1 = vpack.c.bf16 %v313_v63, %v313_v63 }
 0x30b   : > { %v497_v14 = vpop.permute.xlu0 %496 }
 0x30c   : > { %747 = vmatmul.mubr.msk.bf16.vlgmr.msra.gmra.mrb[0].mxu0 %vm325_vm1, %v314_v1  ;;  %vm498_vm7 = vcmp.eq.s32.totalorder %v497_v14, 1 }
 0x30f   : > { %v539_v15 = vpop.permute.xlu0 %538 }
 0x310   : > { %vm540_vm8 = vcmp.eq.s32.totalorder %v539_v15, 1 }
 0x313   : > { %v581_v16 = vpop.permute.xlu0 %580 }
 0x314   : > { %vm582_vm9 = vcmp.eq.s32.totalorder %v581_v16, 1 }
 0x364   : > { %v435_v0 = vpop.f32.mrb[0].mxu1 }
 0x365   : > { %v437_v3 = vpop.f32.mrb[1].mxu1 }
 0x366   : > { %v454_v5 = vadd.f32 %v437_v3, %v435_v0  ;;  %v439_v6 = vpop.f32.mrb[2].mxu1 }
 0x367   : > { %v441_v7 = vpop.f32.mrb[3].mxu1 }
 0x368   : > { %v455_v8 = vadd.f32 %v441_v7, %v439_v6 }
 0x36c   : > { %v445_v9 = vpop.f32.mrb[4].mxu1 }
 0x36d   : > { %v447_v10 = vpop.f32.mrb[5].mxu1 }
 0x36e   : > { %v456_v11 = vadd.f32 %v447_v10, %v445_v9  ;;  %v449_v4 = vpop.f32.mrb[6].mxu1 }
 0x36f   : > { %v451_v12 = vpop.f32.mrb[7].mxu1 }
 0x370   : > { %v457_v13 = vadd.f32 %v451_v12, %v449_v4 }
 0x3df   : > { %v363_v17 = vpop.f32.mrb[0].mxu0 }
 0x3e0   : > { %v365_v18 = vpop.f32.mrb[1].mxu0 }
 0x3e1   : > { %v370_v20 = vadd.f32 %v365_v18, %v363_v17  ;;  %v367_v21 = vpop.f32.mrb[2].mxu0 }
 0x3e2   : > { %v368_v22 = vpop.f32.mrb[3].mxu0 }
 0x3e3   : > { %v499_v23 = vsel %vm498_vm7, %v455_v8, %v370_v20  ;;  %v458_v24 = vsel %vm312_vm0, %v454_v5, %v370_v20  ;;  %v541_v25 = vsel %vm540_vm8, %v456_v11, %v370_v20  ;;  %v583_v26 = vsel %vm582_vm9, %v457_v13, %v370_v20 }
 0x3e4   : > { %v500_v27 = vsub.f32 %v499_v23, %v372_v19  ;;  %v459_v28 = vsub.f32 %v458_v24, %v372_v19  ;;  %v542_v29 = vsub.f32 %v541_v25, %v372_v19  ;;  %v584_v30 = vsub.f32 %v583_v26, %v372_v19 }
 0x3e6   : > { %501 = vxpose.xlu0.b32.start.end [1/1] (short) (narrow) %v500_v27, 8  ;;  %460 = vxpose.xlu1.b32.start.end [1/1] (short) (narrow) %v459_v28, 8 }
 0x3ea   : > { %543 = vxpose.xlu1.b32.start.end [1/1] (short) (narrow) %v542_v29, 8 }
 0x3ee   : > { %585 = vxpose.xlu1.b32.start.end [1/1] (short) (narrow) %v584_v30, 8 }
 0x466   : > { %v476_v2 = vpop.trf.xlu1  ;;  %v517_v31 = vpop.trf.xlu0 }
 0x467   : > { %492 = vst.msk [vmem:[%s211_s28] sm:$0xff] %vm295_vm4, %v476_v2  ;;  %750 = vst.msk [vmem:[%s211_s28 + $0x8] sm:$0xff] %vm295_vm4, %v517_v31 }
 0x46a   : > { %v559_v32 = vpop.trf.xlu1 }
 0x46b   : > { %751 = vst.msk [vmem:[%s211_s28 + $0x10] sm:$0xff] %vm295_vm4, %v559_v32 }
 0x46e   : > { %v601_v33 = vpop.trf.xlu1 }
 0x46f   : > { %752 = vst.msk [vmem:[%s211_s28 + $0x18] sm:$0xff] %vm295_vm4, %v601_v33 }
 0x470   : > { %847 = shalt.err (!%p844_p5)
}
 0x471   : > { %s848_s11 = scalar_lea.hbm %s1070_s6, 512  ;;  %s852_s21 = scalar_lea.hbm %s1123_s3, 1024 }
 0x472   : > { %p849_p6 = scmp.ne.s32.totalorder %s1070_s6, %s848_s11  ;;  %p853_p10 = scmp.lt.u32.totalorder %s1070_s6, %s1123_s3 }
 0x473   : > { %p854_p11 = scmp.lt.u32.totalorder %s852_s21, %s848_s11  ;;  %p856_p13 = scmp.lt.u32.totalorder %s848_s11, %s1070_s6 }
 0x474   : > { %p850_p7 = pnand %p849_p6, %p985_p4 }
 0x475   : > { %p855_p12 = por %p854_p11, %p853_p10 }
 0x476   : > { %p851_p9 = pneg %p850_p7 }
 0x477   : > { %p857_p0 = por %p856_p13, %p855_p12 }
 0x479   : > { %p858_p1 = pnand %p857_p0, %p851_p9 }
 0x47b   : > { %861 = shalt.err (!%p858_p1)
}
 0x47c   : > { %s924_s28 = smov 128  }
 0x47d   : > { %762 = dma.vmem_to_hbm [thread:$0]  (%p985_p4), %s1065_s29, 512, %s1070_s6, %s1073_s7, %s924_s28, %s924_s28, %s922_s23  }
 0x47e PF: > { %p768_p2 = scmp.ge.s32.totalorder %s912_s17, 2  ;;  %s649_s30 = sand.u32 1, %s892_s12  }
 0x47f   : > { %s650_s4 = scalar_lea.sflag [#allocation3], %s649_s30 }
 0x480   : > { %p765_p3 = pnand %p768_p2, %p992_p8 }
 0x482   : > { %887 = dma.done.wait (!%p765_p3), %s650_s4, 512  }
 0x483   : > { %889 = vsyncadd (!%p765_p3), %s650_s4, 4294966784  ;;  %s16_s17 = sadd.s32 1, %s912_s17   ;;  %s1126_s12 = smov %s896_s13 }
 0x484   : > { %p13_p5 = scmp.ge.s32.totalorder %s16_s17, 4   ;;  %s1127_s13 = smov %s900_s14 }
 0x485   : > { %s1128_s14 = smov %s998_s25  ;;  %s1129_s15 = smov %s908_s16 }
 0x486   : > { %s1130_s16 = smov %s1132_s20  ;;  %15 = sbr.rel (!%p13_p5) target bundleno = 4 (0x4), region = 76 }
 0x48d   :  { %655 = vsyncpa [#allocation3], 1 }
 0x48e   :  { %657 = vsyncpa [#allocation3 + $0x1], 1 }

</bundles_post_ra>
